<compile_context>
chip_gen: v7x
topology: tpu7x:2x2x1
jax: 0.10.0
libtpu: 0.0.40
codegen_flags: <defaults>
</compile_context>

<pallas_src>
import functools

import jax
import jax.numpy as jnp
from jax.experimental import pallas as pl
from jax.experimental.pallas import tpu as pltpu


def _uce_kernel(*refs, alpha, ignore_index, hw, num_t, use_sigma):
    if use_sigma:
        logits_ref, tgt_ref, sigma_ref, out_ref = refs
    else:
        logits_ref, tgt_ref, out_ref = refs
        sigma_ref = None

    p = pl.program_id(1)   # parallel pixel split
    t = pl.program_id(2)   # arbitrary (reduction) pixel-tile axis

    @pl.when(t == 0)
    def _():
        out_ref[...] = jnp.zeros_like(out_ref)

    logits = logits_ref[...].astype(jnp.float32)       # [Nb, C, tile]
    tgt = tgt_ref[...].astype(jnp.int32)               # [Nb, 1, tile] (native dtype widened here)

    # Numerically stable CE. `shifted` is reused for both the log-sum-exp and
    # the target-logit gather; the max term cancels in the loss.
    m = jnp.max(logits, axis=1, keepdims=True)                      # [Nb,1,tile]
    shifted = logits - m                                            # [Nb,C,tile]
    sum_exp = jnp.sum(jnp.exp(shifted), axis=1, keepdims=True)      # [Nb,1,tile]

    class_ids = jax.lax.broadcasted_iota(jnp.int32, logits.shape, 1)
    tgt_shifted = jnp.sum(jnp.where(class_ids == tgt, shifted, 0.0),
                          axis=1, keepdims=True)                    # [Nb,1,tile]

    loss = jnp.log(sum_exp) - tgt_shifted                           # [Nb,1,tile]

    if use_sigma:
        w = 1.0 + sigma_ref[...].astype(jnp.float32)                # [Nb,1,tile]
        a_int = int(alpha)
        if float(a_int) == float(alpha) and 1 <= a_int <= 4:
            # integer alpha: repeated multiply (avoids per-pixel log+exp on the EUP)
            aw = w
            for _ in range(a_int - 1):
                aw = aw * w
        else:
            aw = w ** jnp.float32(alpha)
        loss = aw * loss

    # Mask ignored pixels, the ragged pixel tail, and any over-provisioned
    # (clamped) pixel tiles created by the parallel pixel split.
    tile = loss.shape[-1]
    pix = (jax.lax.broadcasted_iota(jnp.int32, loss.shape, 2)
           + (p * num_t + t) * tile)
    valid = jnp.logical_and(tgt != ignore_index, pix < hw)

    # Scalar per-step accumulation into the resident (1,1,1) output block.
    out_ref[...] = out_ref[...] + jnp.sum(jnp.where(valid, loss, 0.0))


def _largest_divisor_at_most(n, cap):
    cap = max(1, min(n, int(cap)))
    for d in range(cap, 0, -1):
        if n % d == 0:
            return d
    return 1


def _vmem_limit_bytes():
    """Generation-aware scoped-VMEM limit (leave headroom on v7x's 64 MiB)."""
    try:
        cap = int(pltpu.get_tpu_info().vmem_capacity_bytes)
    except Exception:
        cap = 64 << 20
    return int(min(max(cap - (16 << 20), 32 << 20), 64 << 20))


def uce_loss(sigma, inputs, targets, *, alpha=0.0, ignore_index=255,
             tile_hw=None, n_block=None):
    """Pallas equivalent of Uce.forward(sigma, inputs, targets).

    sigma:   [N, H, W] float
    inputs:  [N, C, H, W] float logits (any float dtype; cast to f32 in VMEM)
    targets: [N, H, W] integer class indices (ignore_index = 255), native dtype
             passes straight through (widened in-kernel, no HBM upcast pass).
    """
    N, C, H, W = inputs.shape
    HW = H * W
    numel = N * HW

    # Free reshapes of contiguous layouts -- no HBM transpose/copy passes.
    logits = inputs.reshape(N, C, HW)        # classes sublane-minor, pixels lane-minor
    tgt = targets.reshape(N, 1, HW)          # lane-dense, native integer dtype

    use_sigma = float(alpha) != 0.0

    in_item = jnp.dtype(inputs.dtype).itemsize
    tgt_item = jnp.dtype(targets.dtype).itemsize
    sig_item = jnp.dtype(sigma.dtype).itemsize if use_sigma else 0
    bytes_per_pixel = C * in_item + tgt_item + sig_item

    # ~4 MiB of input per grid step: well above the ~1 MiB knee where per-step
    # overhead stops mattering, while 2x double-buffered inputs + f32
    # intermediates stay comfortably inside the per-generation VMEM limit.
    block_budget = 4 << 20
    max_pixels = max(128, block_budget // max(bytes_per_pixel, 1))

    # Pixel tile (lane axis): multiple of 128, or the full HW dim.
    tile = int(tile_hw) if tile_hw is not None else int(max_pixels)
    if tile >= HW:
        tile = HW
    else:
        tile = max(128, (tile // 128) * 128)

    # Block multiple batch items per step when one item's pixels are small.
    if n_block is not None:
        nb = int(n_block)
        assert N % nb == 0, "n_block must divide N"
    elif tile == HW:
        nb = _largest_divisor_at_most(N, max_pixels // max(HW, 1))
    else:
        nb = 1
    num_nb = N // nb

    num_t_total = pl.cdiv(HW, tile)
    # Give both TensorCores work when the batch axis alone can't (v7x megacore).
    psplit = 2 if (num_nb == 1 and num_t_total >= 2) else 1
    num_t = pl.cdiv(num_t_total, psplit)
    last_blk = num_t_total - 1

    kernel = functools.partial(
        _uce_kernel,
        alpha=float(alpha),
        ignore_index=int(ignore_index),
        hw=int(HW),
        num_t=int(num_t),
        use_sigma=use_sigma,
    )

    def pix_block(p, t):
        # Clamp so over-provisioned split tiles never DMA out of bounds;
        # their contribution is masked to zero in the kernel.
        return jnp.minimum(p * num_t + t, last_blk)

    in_specs = [
        pl.BlockSpec((nb, C, tile), lambda n, p, t: (n, 0, pix_block(p, t))),
        pl.BlockSpec((nb, 1, tile), lambda n, p, t: (n, 0, pix_block(p, t))),
    ]
    operands = [logits, tgt]
    if use_sigma:
        in_specs.append(
            pl.BlockSpec((nb, 1, tile), lambda n, p, t: (n, 0, pix_block(p, t))))
        operands.append(sigma.reshape(N, 1, HW))

    partials = pl.pallas_call(
        kernel,
        out_shape=jax.ShapeDtypeStruct((num_nb * psplit, 1, 1), jnp.float32),
        grid_spec=pltpu.PrefetchScalarGridSpec(
            num_scalar_prefetch=0,
            grid=(num_nb, psplit, num_t),
            in_specs=in_specs,
            out_specs=pl.BlockSpec((1, 1, 1),
                                   lambda n, p, t: (n * psplit + p, 0, 0)),
        ),
        compiler_params=pltpu.CompilerParams(
            dimension_semantics=("parallel", "parallel", "arbitrary"),
            vmem_limit_bytes=_vmem_limit_bytes()),
    )(*operands)

    # torch divides by numel(loss) == N*H*W (includes ignored pixels)
    return jnp.sum(partials) / jnp.float32(numel)


def uce_reference(sigma, inputs, targets, *, alpha=0.0, ignore_index=255):
    """Pure-JAX reference matching torch semantics."""
    logits = jnp.transpose(inputs, (0, 2, 3, 1)).astype(jnp.float32)  # NHWC
    logp = jax.nn.log_softmax(logits, axis=-1)
    valid = targets != ignore_index
    t_safe = jnp.where(valid, targets, 0)
    ce = -jnp.take_along_axis(logp, t_safe[..., None].astype(jnp.int32), axis=-1)[..., 0]
    ce = jnp.where(valid, ce, 0.0)
    loss = (1.0 + sigma.astype(jnp.float32)) ** alpha * ce
    return jnp.sum(loss) / loss.size


if __name__ == "__main__":
    keys = jax.random.split(jax.random.PRNGKey(0), 12)

    # Case 1: module defaults (alpha = 0 -> sigma path elided). Auto tiling:
    # full-HW tile, both batch items blocked into a single grid step.
    N, C, H, W = 2, 4, 16, 16
    inputs = jax.random.normal(keys[0], (N, C, H, W), dtype=jnp.float32)
    targets = jax.random.randint(keys[1], (N, H, W), 0, C, dtype=jnp.int32)
    targets = jnp.where(jax.random.bernoulli(keys[2], 0.1, (N, H, W)),
                        255, targets).astype(jnp.int32)
    sigma = jax.random.uniform(keys[3], (N, H, W), dtype=jnp.float32)

    out0 = jax.block_until_ready(uce_loss(sigma, inputs, targets, alpha=0.0))
    ref0 = uce_reference(sigma, inputs, targets, alpha=0.0)
    assert jnp.allclose(out0, ref0, rtol=1e-5, atol=1e-5), (out0, ref0)

    # Case 2: alpha=2 (integer fast path), sigma-weighted, ragged pixel tail.
    # Forced small tiles + n_block so the batched-N block, the 2-way parallel
    # pixel split and the clamped excess tile are all exercised.
    N2, C2, H2, W2 = 2, 4, 16, 20   # HW = 320 -> tiles of 128 + ragged tail
    inputs2 = jax.random.normal(keys[4], (N2, C2, H2, W2), dtype=jnp.float32)
    targets2 = jax.random.randint(keys[5], (N2, H2, W2), 0, C2, dtype=jnp.int32)
    targets2 = jnp.where(jax.random.bernoulli(keys[6], 0.1, (N2, H2, W2)),
                         255, targets2).astype(jnp.int32)
    sigma2 = jax.random.uniform(keys[7], (N2, H2, W2), dtype=jnp.float32)

    out1 = jax.block_until_ready(
        uce_loss(sigma2, inputs2, targets2, alpha=2.0, tile_hw=128, n_block=2))
    ref1 = uce_reference(sigma2, inputs2, targets2, alpha=2.0)
    assert jnp.allclose(out1, ref1, rtol=1e-5, atol=1e-5), (out1, ref1)

    # Case 3: non-integer alpha (generic pow path) with bf16 logits, auto tiling.
    N3, C3, H3, W3 = 2, 6, 16, 16
    inputs3 = jax.random.normal(keys[8], (N3, C3, H3, W3), dtype=jnp.bfloat16)
    targets3 = jax.random.randint(keys[9], (N3, H3, W3), 0, C3, dtype=jnp.int32)
    targets3 = jnp.where(jax.random.bernoulli(keys[10], 0.1, (N3, H3, W3)),
                         255, targets3).astype(jnp.int32)
    sigma3 = jax.random.uniform(keys[11], (N3, H3, W3), dtype=jnp.float32)

    out2 = jax.block_until_ready(uce_loss(sigma3, inputs3, targets3, alpha=2.5))
    ref2 = uce_reference(sigma3, inputs3, targets3, alpha=2.5)
    assert jnp.allclose(out2, ref2, rtol=1e-4, atol=1e-4), (out2, ref2)

    print("KERNEL_OK")
</pallas_src>

<mosaic_0001>
module attributes {stable_mosaic.version = 11 : i64} {
  func.func @_uce_kernel(%arg0: i32, %arg1: i32, %arg2: i32, %arg3: memref<2x4x256xf32, #tpu.memory_space<vmem>>, %arg4: memref<2x1x256xi32, #tpu.memory_space<vmem>>, %arg5: memref<1x1x1xf32, #tpu.memory_space<vmem>>) attributes {dimension_semantics = [#tpu.dimension_semantics<parallel>, #tpu.dimension_semantics<parallel>, #tpu.dimension_semantics<arbitrary>], iteration_bounds = array<i64: 1, 1, 1>, scalar_prefetch = 0 : i64, scratch_operands = 0 : i64, tpu.core_type = #tpu.core_type<tc>, window_params = [{transform_indices = @transform_0, window_bounds = array<i64: 2, 4, 256>}, {transform_indices = @transform_1, window_bounds = array<i64: 2, 1, 256>}, {transform_indices = @transform_2, window_bounds = array<i64: 1, 1, 1>}]} {
    %c0_i32 = arith.constant 0 : i32
    %0 = arith.cmpi eq, %arg2, %c0_i32 : i32
    %1 = arith.extui %0 : i1 to i32
    %c0_i32_0 = arith.constant 0 : i32
    %2 = arith.cmpi ne, %1, %c0_i32_0 : i32
    scf.if %2 {
      %cst_18 = arith.constant 0.000000e+00 : f32
      %42 = vector.broadcast %cst_18 : f32 to vector<1x1x1xf32>
      %c0_19 = arith.constant 0 : index
      %c0_20 = arith.constant 0 : index
      %c0_21 = arith.constant 0 : index
      %43 = vector.load %arg5[%c0_19, %c0_20, %c0_21] : memref<1x1x1xf32, #tpu.memory_space<vmem>>, vector<1x1x1xf32>
      tpu.vector_store %arg5[%c0_19, %c0_20, %c0_21], %42 {strides = array<i32>} : memref<1x1x1xf32, #tpu.memory_space<vmem>>, vector<1x1x1xf32>,
    } else {
    }
    %c0 = arith.constant 0 : index
    %c0_1 = arith.constant 0 : index
    %c0_2 = arith.constant 0 : index
    %3 = vector.load %arg3[%c0, %c0_1, %c0_2] : memref<2x4x256xf32, #tpu.memory_space<vmem>>, vector<2x4x256xf32>
    %c0_3 = arith.constant 0 : index
    %c0_4 = arith.constant 0 : index
    %c0_5 = arith.constant 0 : index
    %4 = vector.load %arg4[%c0_3, %c0_4, %c0_5] : memref<2x1x256xi32, #tpu.memory_space<vmem>>, vector<2x1x256xi32>
    %cst = arith.constant dense<0xFF800000> : vector<2x256xf32>
    %5 = vector.multi_reduction <maximumf>, %3, %cst [1] : vector<2x4x256xf32> to vector<2x256xf32>
    %6 = vector.shape_cast %5 : vector<2x256xf32> to vector<2x1x256xf32>
    %7 = vector.broadcast %6 : vector<2x1x256xf32> to vector<2x4x256xf32>
    %8 = arith.subf %3, %7 : vector<2x4x256xf32>
    %9 = math.exp %8 : vector<2x4x256xf32>
    %cst_6 = arith.constant dense<0.000000e+00> : vector<2x256xf32>
    %10 = vector.multi_reduction <add>, %9, %cst_6 [1] : vector<2x4x256xf32> to vector<2x256xf32>
    %11 = vector.shape_cast %10 : vector<2x256xf32> to vector<2x1x256xf32>
    %12 = tpu.iota {dimensions = array<i32: 1>} : vector<2x4x256xi32>
    %13 = vector.broadcast %4 : vector<2x1x256xi32> to vector<2x4x256xi32>
    %14 = arith.cmpi eq, %12, %13 : vector<2x4x256xi32>
    %cst_7 = arith.constant 0.000000e+00 : f32
    %15 = vector.broadcast %cst_7 : f32 to vector<2x4x256xf32>
    %16 = arith.select %14, %8, %15 : vector<2x4x256xi1>, vector<2x4x256xf32>
    %cst_8 = arith.constant dense<0.000000e+00> : vector<2x256xf32>
    %17 = vector.multi_reduction <add>, %16, %cst_8 [1] : vector<2x4x256xf32> to vector<2x256xf32>
    %18 = vector.shape_cast %17 : vector<2x256xf32> to vector<2x1x256xf32>
    %19 = math.log %11 : vector<2x1x256xf32>
    %20 = arith.subf %19, %18 : vector<2x1x256xf32>
    %21 = tpu.iota {dimensions = array<i32: 2>} : vector<2x1x256xi32>
    %c1_i32 = arith.constant 1 : i32
    %22 = arith.muli %arg1, %c1_i32 : i32
    %23 = arith.addi %22, %arg2 : i32
    %c256_i32 = arith.constant 256 : i32
    %24 = arith.muli %23, %c256_i32 : i32
    %25 = vector.broadcast %24 : i32 to vector<2x1x256xi32>
    %26 = arith.addi %21, %25 : vector<2x1x256xi32>
    %c255_i32 = arith.constant 255 : i32
    %27 = vector.broadcast %c255_i32 : i32 to vector<2x1x256xi32>
    %28 = arith.cmpi ne, %4, %27 : vector<2x1x256xi32>
    %c256_i32_9 = arith.constant 256 : i32
    %29 = vector.broadcast %c256_i32_9 : i32 to vector<2x1x256xi32>
    %30 = arith.cmpi slt, %26, %29 : vector<2x1x256xi32>
    %31 = arith.andi %28, %30 : vector<2x1x256xi1>
    %c0_10 = arith.constant 0 : index
    %c0_11 = arith.constant 0 : index
    %c0_12 = arith.constant 0 : index
    %32 = vector.load %arg5[%c0_10, %c0_11, %c0_12] : memref<1x1x1xf32, #tpu.memory_space<vmem>>, vector<1x1x1xf32>
    %cst_13 = arith.constant 0.000000e+00 : f32
    %33 = vector.broadcast %cst_13 : f32 to vector<2x1x256xf32>
    %34 = arith.select %31, %20, %33 : vector<2x1x256xi1>, vector<2x1x256xf32>
    %35 = vector.shape_cast %34 : vector<2x1x256xf32> to vector<1x2x1x256xf32>
    %cst_14 = arith.constant dense<0.000000e+00> : vector<1xf32>
    %36 = vector.multi_reduction <add>, %35, %cst_14 [1, 2, 3] : vector<1x2x1x256xf32> to vector<1xf32>
    %37 = vector.shape_cast %36 : vector<1xf32> to vector<1x1x1x1xf32>
    %38 = vector.extract %37[0, 0, 0, 0] : f32 from vector<1x1x1x1xf32>
    %39 = vector.broadcast %38 : f32 to vector<1x1x1xf32>
    %40 = arith.addf %32, %39 : vector<1x1x1xf32>
    %c0_15 = arith.constant 0 : index
    %c0_16 = arith.constant 0 : index
    %c0_17 = arith.constant 0 : index
    %41 = vector.load %arg5[%c0_15, %c0_16, %c0_17] : memref<1x1x1xf32, #tpu.memory_space<vmem>>, vector<1x1x1xf32>
    tpu.vector_store %arg5[%c0_15, %c0_16, %c0_17], %40 {strides = array<i32>} : memref<1x1x1xf32, #tpu.memory_space<vmem>>, vector<1x1x1xf32>,
    return
  }
  func.func @transform_0(%arg0: i32, %arg1: i32, %arg2: i32) -> (i32, i32, i32) {
    %c1_i32 = arith.constant 1 : i32
    %0 = arith.muli %arg1, %c1_i32 : i32
    %1 = arith.addi %0, %arg2 : i32
    %c0_i32 = arith.constant 0 : i32
    %2 = arith.minsi %1, %c0_i32 : i32
    %c0_i32_0 = arith.constant 0 : i32
    %c0_i32_1 = arith.constant 0 : i32
    return %arg0, %c0_i32_0, %2 : i32, i32, i32
  }
  func.func @transform_1(%arg0: i32, %arg1: i32, %arg2: i32) -> (i32, i32, i32) {
    %c1_i32 = arith.constant 1 : i32
    %0 = arith.muli %arg1, %c1_i32 : i32
    %1 = arith.addi %0, %arg2 : i32
    %c0_i32 = arith.constant 0 : i32
    %2 = arith.minsi %1, %c0_i32 : i32
    %c0_i32_0 = arith.constant 0 : i32
    %c0_i32_1 = arith.constant 0 : i32
    return %arg0, %c0_i32_0, %2 : i32, i32, i32
  }
  func.func @transform_2(%arg0: i32, %arg1: i32, %arg2: i32) -> (i32, i32, i32) {
    %c1_i32 = arith.constant 1 : i32
    %0 = arith.muli %arg0, %c1_i32 : i32
    %1 = arith.addi %0, %arg1 : i32
    %c0_i32 = arith.constant 0 : i32
    %c0_i32_0 = arith.constant 0 : i32
    %c0_i32_1 = arith.constant 0 : i32
    return %1, %c0_i32, %c0_i32_0 : i32, i32, i32
  }
}

</mosaic_0001>

<bundles_post_ra>
// kernel: tpu_custom_call.1
= control target key start
LH: loop header
LB: loop body
LE: loop exit
PB: predicated region body
PF: predicated region fallthrough
CT: control target
= control target key end

     0   :  { %7 = vsyncpa [#allocation3], 0  ;;  %s567_s0 = inlined_call_operand.hbm [shape: f32[2,4,256], index: 0, kind: input, shape index: {}]   ;;  %s568_s1 = inlined_call_operand.hbm [shape: s32[2,1,256], index: 1, kind: input, shape index: {}]   ;;  %s569_s2 = inlined_call_operand.hbm [shape: f32[1,1,1], index: 2, kind: output, shape index: {}]  }
   0x1   :  { %8 = vsyncpa [#allocation6], 0 }
   0x2   :  { %9 = vsyncpa [#allocation4], 0  ;;  %s461_s9 = smov [#allocation2]   ;;  %s389_s13 = scalar_lea.hbm %s567_s0, 256 }
   0x3   :  { %s21_s10 = sshll.u32 %s461_s9, 4  ;;  %p390_p0 = scmp.ne.s32.totalorder %s567_s0, %s389_s13  ;;  %s22_s10 = int_to_ptr.vmem [resolvable:$true] %s21_s10 }
   0x4   :  { %p393_p1 = scmp.lt.u32.totalorder %s389_s13, %s567_s0 }
   0x6   :  { %p395_p2 = pnand %p393_p1, %p390_p0 }
   0x8   :  { %398 = shalt.err (!%p395_p2)
}
   0x9   :  { %s399_s18 = scalar_lea.vmem %s22_s10, 256  ;;  %p404_p4 = scmp.lt.s32.totalorder %s22_s10, %s22_s10 }
   0xa   :  { %p400_p3 = scmp.ne.s32.totalorder %s22_s10, %s399_s18  ;;  %p405_p5 = scmp.lt.s32.totalorder %s399_s18, %s399_s18 }
   0xc   :  { %p406_p6 = por %p405_p5, %p404_p4 }
   0xe   :  { %p407_p7 = pnand %p406_p6, %p400_p3 }
  0x10   :  { %410 = shalt.err (!%p407_p7)
}
  0x11   :  { %s462_s19 = smov 128   ;;  %s463_s20 = smov 8  }
  0x12   :  { %27 = dma.hbm_to_vmem [thread:$0]  %s567_s0, 256, %s22_s10, [#allocation3], %s462_s19, %s462_s19, %s463_s20  }
  0x13   :  { %s464_s23 = smov [#allocation5]   ;;  %s411_s27 = scalar_lea.hbm %s568_s1, 64 }
  0x14   :  { %s39_s24 = sshll.u32 %s464_s23, 4  ;;  %p412_p8 = scmp.ne.s32.totalorder %s568_s1, %s411_s27  ;;  %s40_s24 = int_to_ptr.vmem [resolvable:$true] %s39_s24 }
  0x15   :  { %p415_p9 = scmp.lt.u32.totalorder %s411_s27, %s568_s1 }
  0x17   :  { %p417_p10 = pnand %p415_p9, %p412_p8 }
  0x19   :  { %420 = shalt.err (!%p417_p10)
}
  0x1a   :  { %s421_s4 = scalar_lea.vmem %s40_s24, 64  ;;  %p426_p12 = scmp.lt.s32.totalorder %s40_s24, %s40_s24 }
  0x1b   :  { %p422_p11 = scmp.ne.s32.totalorder %s40_s24, %s421_s4  ;;  %p427_p13 = scmp.lt.s32.totalorder %s421_s4, %s421_s4 }
  0x1d   :  { %p428_p0 = por %p427_p13, %p426_p12 }
  0x1f   :  { %p429_p1 = pnand %p428_p0, %p422_p11 }
  0x21   :  { %432 = shalt.err (!%p429_p1)
}
  0x22   :  { %s465_s0 = smov 32   ;;  %s466_s5 = smov 2  }
  0x23   :  { %45 = dma.hbm_to_vmem [thread:$0]  %s568_s1, 64, %s40_s24, [#allocation6], %s465_s0, %s465_s0, %s466_s5  }
  0x24   :  { %455 = dma.done.wait [#allocation3], 256  }
  0x25   :  { %456 = vsyncadd [#allocation3], 4294967040 }
  0x26   :  { %457 = dma.done.wait [#allocation6], 64  }
  0x27   :  { %458 = vsyncadd [#allocation6], 4294967232  ;;  %vm65_vm0 = vcmask 0   ;;  %v467_v0 = vmov 0.0   ;;  %vm77_vm1 = vcmask 1043456   ;;  %v67_v1 = vld [vmem:[#allocation2] sm:$0xff]  ;;  %v154_v23 = vlaneseq }
  0x28   :  { %66 = vst.msk [vmem:[#allocation7] sm:$0x1] %vm65_vm0, %v467_v0  ;;  %v68_v2 = vld [vmem:[#allocation2 + $0x8] sm:$0xff]  ;;  %v73_v3 = vcombine.high %v67_v1, %v67_v1  ;;  %v78_v5 = vsel %vm77_vm1, %v67_v1, -inf  ;;  %v520_v40 = vld [vmem:[#allocation5] sm:$0x3] }
  0x29   :  { %v74_v4 = vcombine.high %v68_v2, %v68_v2  ;;  %v92_v6 = vsel %vm77_vm1, %v68_v2, -inf  ;;  %v79_v7 = vrot.slane %v78_v5, 4  ;;  %v515_v34 = vshrl.u32 %v154_v23, 7  ;;  %v525_v42 = vld [vmem:[#allocation5 + $0x2] sm:$0x3]  ;;  %s470_s1 = smov [#allocation7]  }
  0x2a   :  { %v93_v8 = vrot.slane %v92_v6, 4  ;;  %v85_v9 = vsel %vm77_vm1, %v73_v3, -inf  ;;  %vm234_vm6 = vcmp.ne.s32.totalorder %v520_v40, 255  ;;  %vm235_vm8 = vcmp.ne.s32.totalorder %v525_v42, 255  ;;  %s349_s8 = sshll.u32 %s470_s1, 4  ;;  %s350_s8 = int_to_ptr.vmem [resolvable:$true] %s349_s8 }
  0x2b   :  { %v99_v10 = vsel %vm77_vm1, %v74_v4, -inf  ;;  %v80_v11 = vmax.f32 %v78_v5, %v79_v7  ;;  %v86_v12 = vrot.slane %v85_v9, 4  ;;  %v518_v39 = vsub.s32 0, %v515_v34  ;;  %s433_s10 = scalar_lea.vmem %s350_s8, 16  ;;  %s437_s11 = scalar_lea.vmem %s350_s8, 32 }
  0x2c   :  { %v94_v13 = vmax.f32 %v92_v6, %v93_v8  ;;  %v100_v14 = vrot.slane %v99_v10, 4  ;;  %v523_v41 = vsub.s32 1, %v515_v34  ;;  %vm319_vm11 = vcmask 1040384   ;;  %p434_p2 = scmp.ne.s32.totalorder %s350_s8, %s433_s10  ;;  %p438_p3 = scmp.lt.s32.totalorder %s350_s8, %s350_s8 }
  0x2d   :  { %v81_v15 = vrot.slane %v80_v11, 2  ;;  %v87_v16 = vmax.f32 %v85_v9, %v86_v12  ;;  %v159_v45 = vrot.slane %v520_v40, %v518_v39  ;;  %v167_v46 = vrot.slane %v525_v42, %v518_v39  ;;  %p439_p4 = scmp.lt.s32.totalorder %s437_s11, %s433_s10 }
  0x2e   :  { %v95_v17 = vrot.slane %v94_v13, 2  ;;  %v101_v18 = vmax.f32 %v99_v10, %v100_v14  ;;  %v163_v47 = vrot.slane %v520_v40, %v523_v41  ;;  %v171_v48 = vrot.slane %v525_v42, %v523_v41 }
  0x2f   :  { %v82_v19 = vmax.f32 %v80_v11, %v81_v15  ;;  %v88_v20 = vrot.slane %v87_v16, 2  ;;  %vm172_vm2 = vcmp.eq.s32.totalorder %v515_v34, %v159_v45  ;;  %vm174_vm3 = vcmp.eq.s32.totalorder %v515_v34, %v167_v46  ;;  %p440_p5 = por %p439_p4, %p438_p3 }
  0x30   :  { %v96_v21 = vmax.f32 %v94_v13, %v95_v17  ;;  %v102_v22 = vrot.slane %v101_v18, 2  ;;  %vm173_vm4 = vcmp.eq.s32.totalorder %v515_v34, %v163_v47  ;;  %vm175_vm5 = vcmp.eq.s32.totalorder %v515_v34, %v171_v48 }
  0x31   :  { %v83_v24 = vrot.slane %v82_v19, 1  ;;  %v89_v25 = vmax.f32 %v87_v16, %v88_v20  ;;  %p441_p6 = pnand %p440_p5, %p434_p2 }
  0x32   :  { %v97_v26 = vrot.slane %v96_v21, 1  ;;  %v103_v27 = vmax.f32 %v101_v18, %v102_v22 }
  0x33   :  { %v84_v28 = vmax.f32 %v82_v19, %v83_v24  ;;  %v90_v29 = vrot.slane %v89_v25, 1 }
  0x34   :  { %v98_v30 = vmax.f32 %v96_v21, %v97_v26  ;;  %v104_v31 = vrot.slane %v103_v27, 1 }
  0x35   :  { %v91_v32 = vmax.f32 %v89_v25, %v90_v29 }
  0x36   :  { %v105_v33 = vmax.f32 %v103_v27, %v104_v31 }
  0x37   :  { %v110_v35 = vcombine.low %v84_v28, %v91_v32 }
  0x38   :  { %v111_v36 = vcombine.low %v98_v30, %v105_v33  ;;  %v468_v30 = vmov 1966171168  }
  0x39   :  { %v114_v37 = vsub.f32 %v67_v1, %v110_v35  ;;  %v242_v31 = vunpack.c.l.s4 %v468_v30 }
  0x3a   :  { %v115_v38 = vsub.f32 %v68_v2, %v111_v36 }
  0x3b   :  { %v116_v43 = vmul.f32 1.442695, %v114_v37  ;;  %v178_v49 = vcombine.high %v114_v37, %v114_v37  ;;  %v182_v51 = vsel %vm172_vm2, %v114_v37, 0.0  ;;  %v243_v47 = vunpack.c.0.s8 %v242_v31 }
  0x3c   :  { %v118_v44 = vmul.f32 1.442695, %v115_v38  ;;  %v179_v50 = vcombine.high %v115_v38, %v115_v38  ;;  %v184_v52 = vsel %vm174_vm3, %v115_v38, 0.0  ;;  %v186_v56 = vsel %vm77_vm1, %v182_v51, 0.0 }
  0x3d   :  { %377 = vpow2.f32 %v116_v43  ;;  %v183_v53 = vsel %vm173_vm4, %v178_v49, 0.0  ;;  %v200_v60 = vsel %vm77_vm1, %v184_v52, 0.0  ;;  %v187_v3 = vrot.slane %v186_v56, 4 }
  0x3e   :  { %379 = vpow2.f32 %v118_v44  ;;  %v185_v55 = vsel %vm175_vm5, %v179_v50, 0.0  ;;  %v193_v0 = vsel %vm77_vm1, %v183_v53, 0.0  ;;  %v201_v8 = vrot.slane %v200_v60, 4 }
  0x3f   :  { %v207_v4 = vsel %vm77_vm1, %v185_v55, 0.0  ;;  %v194_v11 = vrot.slane %v193_v0, 4  ;;  %v188_v17 = vadd.f32 %v187_v3, %v186_v56  ;;  %v469_v52 = vmov 1  }
  0x40   :  { %v208_v14 = vrot.slane %v207_v4, 4  ;;  %v202_v20 = vadd.f32 %v201_v8, %v200_v60  ;;  %v240_v53 = vcombine.low %v469_v52, %v469_v52 }
  0x41   :  { %v195_v23 = vadd.f32 %v194_v11, %v193_v0  ;;  %v189_v29 = vrot.slane %v188_v17, 2 }
  0x42   :  { %v209_v26 = vadd.f32 %v208_v14, %v207_v4  ;;  %v203_v35 = vrot.slane %v202_v20, 2 }
  0x43   :  { %v196_v38 = vrot.slane %v195_v23, 2  ;;  %v190_v46 = vadd.f32 %v189_v29, %v188_v17 }
  0x44   :  { %v210_v44 = vrot.slane %v209_v26, 2  ;;  %v204_v48 = vadd.f32 %v203_v35, %v202_v20 }
  0x45   :  { %v197_v49 = vadd.f32 %v196_v38, %v195_v23  ;;  %v191_v51 = vrot.slane %v190_v46, 1 }
  0x46   :  { %v211_v50 = vadd.f32 %v210_v44, %v209_v26  ;;  %v205_v55 = vrot.slane %v204_v48, 1 }
  0x47   :  { %v378_v54 = vpop.eup %377  ;;  %v198_v56 = vrot.slane %v197_v49, 1 }
  0x48   :  { %v380_v57 = vpop.eup %379  ;;  %v122_v58 = vcombine.high %v378_v54, %v378_v54  ;;  %v126_v59 = vsel %vm77_vm1, %v378_v54, 0.0  ;;  %v246_v54 = vsub.s32 %v243_v47, %v515_v34 }
  0x49   :  { %v123_v61 = vcombine.high %v380_v57, %v380_v57  ;;  %v127_v62 = vrot.slane %v126_v59, 4  ;;  %v140_v63 = vsel %vm77_vm1, %v380_v57, 0.0  ;;  %v212_v57 = vrot.slane %v211_v50, 1 }
  0x4a   :  { %v133_v1 = vsel %vm77_vm1, %v122_v58, 0.0  ;;  %v141_v2 = vrot.slane %v140_v63, 4  ;;  %v192_v58 = vadd.f32 %v191_v51, %v190_v46 }
  0x4b   :  { %v128_v5 = vadd.f32 %v127_v62, %v126_v59  ;;  %v134_v6 = vrot.slane %v133_v1, 4  ;;  %v147_v7 = vsel %vm77_vm1, %v123_v61, 0.0  ;;  %v247_v59 = vrot.slane %v240_v53, %v246_v54 }
  0x4c   :  { %v142_v9 = vadd.f32 %v141_v2, %v140_v63  ;;  %v148_v10 = vrot.slane %v147_v7, 4  ;;  %v206_v61 = vadd.f32 %v205_v55, %v204_v48  ;;  %v199_v63 = vadd.f32 %v198_v56, %v197_v49 }
  0x4d   :  { %v129_v12 = vrot.slane %v128_v5, 2  ;;  %v135_v13 = vadd.f32 %v134_v6, %v133_v1  ;;  %v213_v2 = vadd.f32 %v212_v57, %v211_v50 }
  0x4e   :  { %v143_v15 = vrot.slane %v142_v9, 2  ;;  %v149_v16 = vadd.f32 %v148_v10, %v147_v7  ;;  %v254_v7 = vrot.slane %v247_v59, %v246_v54 }
  0x4f   :  { %v130_v18 = vadd.f32 %v129_v12, %v128_v5  ;;  %v136_v19 = vrot.slane %v135_v13, 2 }
  0x50   :  { %v144_v21 = vadd.f32 %v143_v15, %v142_v9  ;;  %v150_v22 = vrot.slane %v149_v16, 2  ;;  %vm255_vm7 = vcmp.ne.s32.totalorder %v254_v7, 0 }
  0x51   :  { %v131_v24 = vrot.slane %v130_v18, 1  ;;  %v137_v25 = vadd.f32 %v136_v19, %v135_v13  ;;  %vm256_vm9 = vmand %vm234_vm6, %vm255_vm7 }
  0x52   :  { %v145_v27 = vrot.slane %v144_v21, 1  ;;  %v151_v28 = vadd.f32 %v150_v22, %v149_v16  ;;  %vm257_vm10 = vmand %vm235_vm8, %vm255_vm7 }
  0x53   :  { %v132_v32 = vadd.f32 %v131_v24, %v130_v18  ;;  %v138_v33 = vrot.slane %v137_v25, 1 }
  0x54   :  { %v146_v36 = vadd.f32 %v145_v27, %v144_v21  ;;  %v152_v37 = vrot.slane %v151_v28, 1 }
  0x55   :  { %v139_v43 = vadd.f32 %v138_v33, %v137_v25  ;;  %381 = vlog2.f32 %v132_v32 }
  0x56   :  { %v153_v45 = vadd.f32 %v152_v37, %v151_v28  ;;  %383 = vlog2.f32 %v146_v36  ;;  %v258_v36 = vld [vmem:[#allocation7] sm:$0x1] }
  0x57   :  { %385 = vlog2.f32 %v139_v43 }
  0x58   :  { %387 = vlog2.f32 %v153_v45 }
  0x5f   :  { %v382_v60 = vpop.eup %381 }
  0x60   :  { %v384_v62 = vpop.eup %383  ;;  %v215_v0 = vmul.f32 0.6931472, %v382_v60 }
  0x61   :  { %v386_v1 = vpop.eup %385  ;;  %v219_v3 = vmul.f32 0.6931472, %v384_v62 }
  0x62   :  { %v388_v4 = vpop.eup %387  ;;  %v217_v5 = vmul.f32 0.6931472, %v386_v1  ;;  %v222_v6 = vsub.f32 %v215_v0, %v192_v58 }
  0x63   :  { %v221_v8 = vmul.f32 0.6931472, %v388_v4  ;;  %v224_v9 = vsub.f32 %v219_v3, %v206_v61 }
  0x64   :  { %v223_v34 = vsub.f32 %v217_v5, %v199_v63 }
  0x65   :  { %v225_v10 = vsub.f32 %v221_v8, %v213_v2 }
  0x66   :  { %v263_v11 = vcombine.low %v222_v6, %v223_v34 }
  0x67   :  { %v278_v12 = vcombine.low %v224_v9, %v225_v10 }
  0x68   :  { %v270_v13 = vrot.slane %v263_v11, %v246_v54 }
  0x69   :  { %v285_v14 = vrot.slane %v278_v12, %v246_v54 }
  0x6a   :  { %v277_v15 = vrot.slane %v270_v13, %v246_v54 }
  0x6b   :  { %v292_v16 = vrot.slane %v285_v14, %v246_v54 }
  0x6c   :  { %v295_v17 = vsel %vm256_vm9, %v277_v15, 0.0 }
  0x6d   :  { %v296_v18 = vsel %vm257_vm10, %v292_v16, 0.0  ;;  %v302_v19 = vrot.slane %v295_v17, %v518_v39  ;;  %v306_v20 = vrot.slane %v295_v17, %v523_v41 }
  0x6e   :  { %v310_v40 = vrot.slane %v296_v18, %v518_v39  ;;  %v314_v21 = vrot.slane %v296_v18, %v523_v41 }
  0x6f   :  { %v320_v22 = vsel %vm319_vm11, %v302_v19, 0.0  ;;  %v321_v42 = vsel %vm319_vm11, %v306_v20, 0.0 }
  0x70   :  { %v322_v23 = vadd.f32 %v321_v42, %v320_v22  ;;  %v323_v24 = vsel %vm319_vm11, %v310_v40, 0.0  ;;  %v325_v25 = vsel %vm319_vm11, %v314_v21, 0.0 }
  0x72   :  { %v324_v26 = vadd.f32 %v323_v24, %v322_v23 }
  0x74   :  { %v326_v27 = vadd.f32 %v325_v25, %v324_v26 }
  0x76   :  { %327 = vadd.xlane.f32.xlu0 %v326_v27 }
 0x103   :  { %v328_v28 = vpop.xlane.xlu0 %327 }
 0x104   :  { %v329_v29 = vrot.slane %v328_v28, 4 }
 0x106   :  { %v330_v30 = vadd.f32 %v329_v29, %v328_v28 }
 0x108   :  { %v331_v31 = vrot.slane %v330_v30, 2 }
 0x10a   :  { %v332_v32 = vadd.f32 %v331_v31, %v330_v30 }
 0x10c   :  { %v333_v33 = vrot.slane %v332_v32, 1 }
 0x10e   :  { %v334_v35 = vadd.f32 %v333_v33, %v332_v32 }
 0x110   :  { %363 = vpush %v334_v35 }
 0x141   :  { %s364_s9 = spop %363 }
 0x142   :  { %v336_v39 = vstv %s364_s9 }
 0x143   :  { %v337_v41 = vadd.f32 %v336_v39, %v258_v36 }
 0x145   :  { %339 = vst.msk [vmem:[#allocation7] sm:$0x1] %vm65_vm0, %v337_v41 }
 0x146   :  { %444 = shalt.err (!%p441_p6)
}
 0x147   :  { %s445_s14 = scalar_lea.hbm %s569_s2, 16 }
 0x148   :  { %p446_p7 = scmp.ne.s32.totalorder %s569_s2, %s445_s14  ;;  %p449_p8 = scmp.lt.u32.totalorder %s445_s14, %s569_s2 }
 0x14a   :  { %p451_p9 = pnand %p449_p8, %p446_p7 }
 0x14c   :  { %454 = shalt.err (!%p451_p9)
}
 0x14d   :  { %352 = dma.vmem_to_hbm [thread:$0]  %s350_s8, 16, %s569_s2, [#allocation4]  }
 0x14e   :  { %459 = dma.done.wait [#allocation4], 16  }
 0x14f   :  { %460 = vsyncadd [#allocation4], 4294967280 }
 0x150   :  { %356 = vsyncpa [#allocation3], 1 }
 0x151   :  { %357 = vsyncpa [#allocation6], 1 }
 0x152   :  { %358 = vsyncpa [#allocation4], 1 }

</bundles_post_ra>
